<compile_context>
chip_gen: v7x
topology: tpu7x:2x2x1
jax: 0.10.0
libtpu: 0.0.40
codegen_flags: <defaults>
</compile_context>

<pallas_src>
import jax
import jax.numpy as jnp
from jax.experimental import pallas as pl
from jax.experimental.pallas import tpu as pltpu


def _round_up(x, m):
    return (x + m - 1) // m * m


def _num_tensorcores():
    """Best-effort TensorCores-per-chip (2 on v7x / v4 / v5p, else 1)."""
    try:
        kind = jax.devices()[0].device_kind.lower()
    except Exception:
        return 1
    if any(tag in kind for tag in ("v7", "v4", "v5p")):
        return 2
    return 1


def _choose_tile_b(B, num_tc, cap=2048):
    """Minimal-padding batch tile: 1 big tile per TC (capped)."""
    b8 = _round_up(max(B, 1), 8)
    if num_tc <= 1:
        n_tiles = pl.cdiv(b8, cap)
    else:
        n_tiles = _round_up(max(num_tc, pl.cdiv(b8, cap)), num_tc)
    tile_b = _round_up(pl.cdiv(B, n_tiles), 8)
    return min(tile_b, _round_up(cap, 8))


# --------------------------------------------------------------------------
# Pallas kernel: full MLP hot path for one batch tile.
#   x    = [obs | act]                       (in-kernel lane concat)
#   h1   = relu(x @ W1 + b1)
#   h2   = relu(h1 @ W2 + b2)
#   head = h2 @ Wh + bh        (cols [0:D) = mu, [D:2D) = sigma, rest = pad)
#   out  = head + mask * (head*head - head)  (squares only sigma columns)
# --------------------------------------------------------------------------
def _stategen_kernel(obs_ref, act_ref,
                     w1_ref, b1_ref,
                     w2_ref, b2_ref,
                     wh_ref, bh_ref,
                     mask_ref,
                     out_ref):
    x = jnp.concatenate([obs_ref[...], act_ref[...]], axis=1)

    h1 = jnp.dot(x, w1_ref[...], preferred_element_type=jnp.float32) + b1_ref[...]
    h1 = jnp.maximum(h1, 0.0)                                         # relu

    h2 = jnp.dot(h1, w2_ref[...], preferred_element_type=jnp.float32) + b2_ref[...]
    h2 = jnp.maximum(h2, 0.0)                                         # relu

    head = jnp.dot(h2, wh_ref[...], preferred_element_type=jnp.float32) + bh_ref[...]

    # mask is 1.0 on the sigma columns, 0.0 elsewhere (including pad columns).
    m = mask_ref[...]
    out_ref[...] = head + m * (head * head - head)


def stategen_forward(obs, actions, params, *, tile_b=None):
    """obs: [B, obs_dim], actions: [B, act_dim] -> (mu [B, obs_dim], var [B, obs_dim])."""
    w1, b1, w2, b2, wh, bh, sig_mask = params
    B, obs_dim = obs.shape
    act_dim = actions.shape[1]
    in_dim = w1.shape[0]
    hidden = w2.shape[0]
    head_pad = wh.shape[1]                     # lane-padded head width (mult. of 128)

    obs = obs.astype(jnp.float32)
    actions = actions.astype(jnp.float32)

    if tile_b is None:
        tile_b = _choose_tile_b(B, _num_tensorcores())
    tile_b = _round_up(tile_b, 8)
    b_pad = _round_up(B, tile_b)
    if b_pad != B:
        obs = jnp.pad(obs, ((0, b_pad - B), (0, 0)))
        actions = jnp.pad(actions, ((0, b_pad - B), (0, 0)))

    grid = (b_pad // tile_b,)

    flops = 2 * b_pad * hidden * (in_dim + hidden + head_pad)
    bytes_accessed = 4 * (
        b_pad * (obs_dim + act_dim)                                   # activations in
        + in_dim * hidden + hidden * hidden + hidden * head_pad       # weights
        + 2 * hidden + 2 * head_pad                                   # biases + mask
        + b_pad * head_pad)                                           # output
    cost = pl.CostEstimate(flops=flops, transcendentals=0,
                           bytes_accessed=bytes_accessed)

    out = pl.pallas_call(
        _stategen_kernel,
        out_shape=jax.ShapeDtypeStruct((b_pad, head_pad), jnp.float32),
        grid=grid,
        in_specs=[
            pl.BlockSpec((tile_b, obs_dim), lambda i: (i, 0)),        # obs tile
            pl.BlockSpec((tile_b, act_dim), lambda i: (i, 0)),        # act tile
            pl.BlockSpec((in_dim, hidden), lambda i: (0, 0)),         # W1 (resident)
            pl.BlockSpec((1, hidden), lambda i: (0, 0)),              # b1
            pl.BlockSpec((hidden, hidden), lambda i: (0, 0)),         # W2
            pl.BlockSpec((1, hidden), lambda i: (0, 0)),              # b2
            pl.BlockSpec((hidden, head_pad), lambda i: (0, 0)),       # fused mu|sigma W
            pl.BlockSpec((1, head_pad), lambda i: (0, 0)),            # fused bias
            pl.BlockSpec((1, head_pad), lambda i: (0, 0)),            # sigma-column mask
        ],
        out_specs=pl.BlockSpec((tile_b, head_pad), lambda i: (i, 0)), # lane-dense out
        compiler_params=pltpu.CompilerParams(
            dimension_semantics=("parallel",)),
        cost_estimate=cost,
    )(obs, actions, w1, b1, w2, b2, wh, bh, sig_mask)

    # Slice the fused head once, then split mu/var from the narrow view.
    head = out[:B, :2 * obs_dim]
    mu = head[:, :obs_dim]
    var = head[:, obs_dim:]
    return mu, var


# --------------------------------------------------------------------------
# Deterministic parameter construction (mirrors nn.init.orthogonal_ + zeros).
# --------------------------------------------------------------------------
def _orthogonal(key, rows, cols, gain=1.0):
    """PyTorch-style orthogonal init for a [rows, cols] matrix."""
    flat = jax.random.normal(key, (max(rows, cols), min(rows, cols)), jnp.float32)
    q, r = jnp.linalg.qr(flat)
    q = q * jnp.sign(jnp.diagonal(r))           # make deterministic / uniform
    if rows < cols:
        q = q.T
    return gain * q[:rows, :cols]


def make_params(key, obs_dim, act_dim, hidden=128):
    in_dim = obs_dim + act_dim
    k1, k2, k3, k4 = jax.random.split(key, 4)
    # PyTorch Linear weights are [out, in]; transpose to [in, out] for x @ W.
    w1 = _orthogonal(k1, hidden, in_dim).T               # [in_dim, hidden]
    w2 = _orthogonal(k2, hidden, hidden).T               # [hidden, hidden]
    wsig = _orthogonal(k3, obs_dim, hidden).T            # [hidden, obs_dim]
    wmu = _orthogonal(k4, obs_dim, hidden, gain=0.01).T  # [hidden, obs_dim]

    b1 = jnp.zeros((1, hidden), jnp.float32)
    b2 = jnp.zeros((1, hidden), jnp.float32)

    # Fuse mu/sigma heads into a single lane-padded weight: one MXU matmul,
    # one lane-dense output.  Padding columns are zero and are sliced off.
    head_pad = _round_up(2 * obs_dim, 128)
    wh = jnp.zeros((hidden, head_pad), jnp.float32)
    wh = wh.at[:, :obs_dim].set(wmu)
    wh = wh.at[:, obs_dim:2 * obs_dim].set(wsig)
    bh = jnp.zeros((1, head_pad), jnp.float32)

    # Sigma-column selector mask (1.0 on the sigma columns), kept VMEM-resident.
    cols = jnp.arange(head_pad)
    sig_mask = ((cols >= obs_dim) & (cols < 2 * obs_dim)).astype(jnp.float32)
    sig_mask = sig_mask.reshape(1, head_pad)

    return (w1, b1, w2, b2, wh, bh, sig_mask)


def _reference(obs, actions, params):
    """Pure-JAX reference of the PyTorch forward pass."""
    w1, b1, w2, b2, wh, bh, _ = params
    obs_dim = obs.shape[1]
    x = jnp.concatenate([obs, actions], axis=1)
    h = jax.nn.relu(x @ w1 + b1)
    h = jax.nn.relu(h @ w2 + b2)
    head = h @ wh + bh
    mu = head[:, :obs_dim]
    sigma = head[:, obs_dim:2 * obs_dim]
    return mu, sigma ** 2


if __name__ == "__main__":
    OBS_DIM, ACT_DIM = 16, 8
    key = jax.random.PRNGKey(0)
    k_obs, k_act, k_par = jax.random.split(key, 3)
    params = make_params(k_par, OBS_DIM, ACT_DIM)

    # Small single-tile case (the module's typical per-step call).
    # NOTE: at B=8 the call is launch-overhead dominated; batch environments
    # (vmap the rollout) so one kernel call sees B >= 256 where possible.
    B = 8
    obs = jax.random.normal(k_obs, (B, OBS_DIM), jnp.float32)
    actions = jax.random.normal(k_act, (B, ACT_DIM), jnp.float32)
    mu, var = stategen_forward(obs, actions, params)
    jax.block_until_ready((mu, var))

    mu_ref, var_ref = _reference(obs, actions, params)
    assert mu.shape == (B, OBS_DIM) and var.shape == (B, OBS_DIM)
    assert jnp.allclose(mu, mu_ref, atol=1e-4, rtol=1e-4)
    assert jnp.allclose(var, var_ref, atol=1e-4, rtol=1e-4)
    assert bool(jnp.all(var >= 0.0))

    # Larger rollout-style batch: exercises the batch grid + padding path
    # (1 tile of 304 on single-TC chips, 2 tiles of 152 on 2-TC chips).
    B2 = 300
    obs2 = jax.random.normal(k_obs, (B2, OBS_DIM), jnp.float32)
    act2 = jax.random.normal(k_act, (B2, ACT_DIM), jnp.float32)
    mu2, var2 = stategen_forward(obs2, act2, params)
    jax.block_until_ready((mu2, var2))
    mu2_ref, var2_ref = _reference(obs2, act2, params)
    assert mu2.shape == (B2, OBS_DIM) and var2.shape == (B2, OBS_DIM)
    assert jnp.allclose(mu2, mu2_ref, atol=1e-4, rtol=1e-4)
    assert jnp.allclose(var2, var2_ref, atol=1e-4, rtol=1e-4)

    print("KERNEL_OK")
</pallas_src>

<mosaic_0001>
module attributes {stable_mosaic.version = 11 : i64} {
  func.func @_stategen_kernel(%arg0: i32, %arg1: memref<8x16xf32, #tpu.memory_space<vmem>>, %arg2: memref<8x8xf32, #tpu.memory_space<vmem>>, %arg3: memref<24x128xf32, #tpu.memory_space<vmem>>, %arg4: memref<1x128xf32, #tpu.memory_space<vmem>>, %arg5: memref<128x128xf32, #tpu.memory_space<vmem>>, %arg6: memref<1x128xf32, #tpu.memory_space<vmem>>, %arg7: memref<128x128xf32, #tpu.memory_space<vmem>>, %arg8: memref<1x128xf32, #tpu.memory_space<vmem>>, %arg9: memref<1x128xf32, #tpu.memory_space<vmem>>, %arg10: memref<8x128xf32, #tpu.memory_space<vmem>>) attributes {dimension_semantics = [#tpu.dimension_semantics<parallel>], iteration_bounds = array<i64: 1>, scalar_prefetch = 0 : i64, scratch_operands = 0 : i64, tpu.core_type = #tpu.core_type<tc>, window_params = [{transform_indices = @transform_0, window_bounds = array<i64: 8, 16>}, {transform_indices = @transform_1, window_bounds = array<i64: 8, 8>}, {pipeline_mode = #tpu.pipeline_mode<synchronous>, transform_indices = @transform_2, window_bounds = array<i64: 24, 128>}, {pipeline_mode = #tpu.pipeline_mode<synchronous>, transform_indices = @transform_3, window_bounds = array<i64: 1, 128>}, {pipeline_mode = #tpu.pipeline_mode<synchronous>, transform_indices = @transform_4, window_bounds = array<i64: 128, 128>}, {pipeline_mode = #tpu.pipeline_mode<synchronous>, transform_indices = @transform_5, window_bounds = array<i64: 1, 128>}, {pipeline_mode = #tpu.pipeline_mode<synchronous>, transform_indices = @transform_6, window_bounds = array<i64: 128, 128>}, {pipeline_mode = #tpu.pipeline_mode<synchronous>, transform_indices = @transform_7, window_bounds = array<i64: 1, 128>}, {pipeline_mode = #tpu.pipeline_mode<synchronous>, transform_indices = @transform_8, window_bounds = array<i64: 1, 128>}, {transform_indices = @transform_9, window_bounds = array<i64: 8, 128>}]} {
    %c0 = arith.constant 0 : index
    %c0_0 = arith.constant 0 : index
    %0 = vector.load %arg1[%c0, %c0_0] : memref<8x16xf32, #tpu.memory_space<vmem>>, vector<8x16xf32>
    %c0_1 = arith.constant 0 : index
    %c0_2 = arith.constant 0 : index
    %1 = vector.load %arg2[%c0_1, %c0_2] : memref<8x8xf32, #tpu.memory_space<vmem>>, vector<8x8xf32>
    %2 = tpu.concatenate %0, %1 in 1 : vector<8x16xf32>, vector<8x8xf32> -> vector<8x24xf32>
    %c0_3 = arith.constant 0 : index
    %c0_4 = arith.constant 0 : index
    %3 = vector.load %arg3[%c0_3, %c0_4] : memref<24x128xf32, #tpu.memory_space<vmem>>, vector<24x128xf32>
    %cst = arith.constant dense<0.000000e+00> : vector<8x128xf32>
    %4 = tpu.matmul %2, %3, %cst {dimension_numbers = #tpu.dot_dimension_numbers<[1], [0], [0], [1], [0, 0, 1, 1], [], []>} : vector<8x24xf32>, vector<24x128xf32>, vector<8x128xf32> -> vector<8x128xf32>
    %c0_5 = arith.constant 0 : index
    %c0_6 = arith.constant 0 : index
    %5 = vector.load %arg4[%c0_5, %c0_6] : memref<1x128xf32, #tpu.memory_space<vmem>>, vector<1x128xf32>
    %6 = vector.broadcast %5 : vector<1x128xf32> to vector<8x128xf32>
    %7 = arith.addf %4, %6 : vector<8x128xf32>
    %cst_7 = arith.constant 0.000000e+00 : f32
    %8 = vector.broadcast %cst_7 : f32 to vector<8x128xf32>
    %9 = arith.maximumf %7, %8 : vector<8x128xf32>
    %c0_8 = arith.constant 0 : index
    %c0_9 = arith.constant 0 : index
    %10 = vector.load %arg5[%c0_8, %c0_9] : memref<128x128xf32, #tpu.memory_space<vmem>>, vector<128x128xf32>
    %cst_10 = arith.constant dense<0.000000e+00> : vector<8x128xf32>
    %11 = tpu.matmul %9, %10, %cst_10 {dimension_numbers = #tpu.dot_dimension_numbers<[1], [0], [0], [1], [0, 0, 1, 1], [], []>} : vector<8x128xf32>, vector<128x128xf32>, vector<8x128xf32> -> vector<8x128xf32>
    %c0_11 = arith.constant 0 : index
    %c0_12 = arith.constant 0 : index
    %12 = vector.load %arg6[%c0_11, %c0_12] : memref<1x128xf32, #tpu.memory_space<vmem>>, vector<1x128xf32>
    %13 = vector.broadcast %12 : vector<1x128xf32> to vector<8x128xf32>
    %14 = arith.addf %11, %13 : vector<8x128xf32>
    %cst_13 = arith.constant 0.000000e+00 : f32
    %15 = vector.broadcast %cst_13 : f32 to vector<8x128xf32>
    %16 = arith.maximumf %14, %15 : vector<8x128xf32>
    %c0_14 = arith.constant 0 : index
    %c0_15 = arith.constant 0 : index
    %17 = vector.load %arg7[%c0_14, %c0_15] : memref<128x128xf32, #tpu.memory_space<vmem>>, vector<128x128xf32>
    %cst_16 = arith.constant dense<0.000000e+00> : vector<8x128xf32>
    %18 = tpu.matmul %16, %17, %cst_16 {dimension_numbers = #tpu.dot_dimension_numbers<[1], [0], [0], [1], [0, 0, 1, 1], [], []>} : vector<8x128xf32>, vector<128x128xf32>, vector<8x128xf32> -> vector<8x128xf32>
    %c0_17 = arith.constant 0 : index
    %c0_18 = arith.constant 0 : index
    %19 = vector.load %arg8[%c0_17, %c0_18] : memref<1x128xf32, #tpu.memory_space<vmem>>, vector<1x128xf32>
    %20 = vector.broadcast %19 : vector<1x128xf32> to vector<8x128xf32>
    %21 = arith.addf %18, %20 : vector<8x128xf32>
    %c0_19 = arith.constant 0 : index
    %c0_20 = arith.constant 0 : index
    %22 = vector.load %arg9[%c0_19, %c0_20] : memref<1x128xf32, #tpu.memory_space<vmem>>, vector<1x128xf32>
    %23 = arith.mulf %21, %21 : vector<8x128xf32>
    %24 = arith.subf %23, %21 : vector<8x128xf32>
    %25 = vector.broadcast %22 : vector<1x128xf32> to vector<8x128xf32>
    %26 = arith.mulf %25, %24 : vector<8x128xf32>
    %27 = arith.addf %21, %26 : vector<8x128xf32>
    %c0_21 = arith.constant 0 : index
    %c0_22 = arith.constant 0 : index
    %28 = vector.load %arg10[%c0_21, %c0_22] : memref<8x128xf32, #tpu.memory_space<vmem>>, vector<8x128xf32>
    tpu.vector_store %arg10[%c0_21, %c0_22], %27 {strides = array<i32>} : memref<8x128xf32, #tpu.memory_space<vmem>>, vector<8x128xf32>,
    return
  }
  func.func @transform_0(%arg0: i32) -> (i32, i32) {
    %c0_i32 = arith.constant 0 : i32
    %c0_i32_0 = arith.constant 0 : i32
    return %arg0, %c0_i32 : i32, i32
  }
  func.func @transform_1(%arg0: i32) -> (i32, i32) {
    %c0_i32 = arith.constant 0 : i32
    %c0_i32_0 = arith.constant 0 : i32
    return %arg0, %c0_i32 : i32, i32
  }
  func.func @transform_2(%arg0: i32) -> (i32, i32) {
    %c0_i32 = arith.constant 0 : i32
    %c0_i32_0 = arith.constant 0 : i32
    %c0_i32_1 = arith.constant 0 : i32
    return %c0_i32, %c0_i32_0 : i32, i32
  }
  func.func @transform_3(%arg0: i32) -> (i32, i32) {
    %c0_i32 = arith.constant 0 : i32
    %c0_i32_0 = arith.constant 0 : i32
    %c0_i32_1 = arith.constant 0 : i32
    return %c0_i32, %c0_i32_0 : i32, i32
  }
  func.func @transform_4(%arg0: i32) -> (i32, i32) {
    %c0_i32 = arith.constant 0 : i32
    %c0_i32_0 = arith.constant 0 : i32
    %c0_i32_1 = arith.constant 0 : i32
    return %c0_i32, %c0_i32_0 : i32, i32
  }
  func.func @transform_5(%arg0: i32) -> (i32, i32) {
    %c0_i32 = arith.constant 0 : i32
    %c0_i32_0 = arith.constant 0 : i32
    %c0_i32_1 = arith.constant 0 : i32
    return %c0_i32, %c0_i32_0 : i32, i32
  }
  func.func @transform_6(%arg0: i32) -> (i32, i32) {
    %c0_i32 = arith.constant 0 : i32
    %c0_i32_0 = arith.constant 0 : i32
    %c0_i32_1 = arith.constant 0 : i32
    return %c0_i32, %c0_i32_0 : i32, i32
  }
  func.func @transform_7(%arg0: i32) -> (i32, i32) {
    %c0_i32 = arith.constant 0 : i32
    %c0_i32_0 = arith.constant 0 : i32
    %c0_i32_1 = arith.constant 0 : i32
    return %c0_i32, %c0_i32_0 : i32, i32
  }
  func.func @transform_8(%arg0: i32) -> (i32, i32) {
    %c0_i32 = arith.constant 0 : i32
    %c0_i32_0 = arith.constant 0 : i32
    %c0_i32_1 = arith.constant 0 : i32
    return %c0_i32, %c0_i32_0 : i32, i32
  }
  func.func @transform_9(%arg0: i32) -> (i32, i32) {
    %c0_i32 = arith.constant 0 : i32
    %c0_i32_0 = arith.constant 0 : i32
    return %arg0, %c0_i32 : i32, i32
  }
}

</mosaic_0001>

<bundles_post_ra>
// kernel: tpu_custom_call.1
= control target key start
LH: loop header
LB: loop body
LE: loop exit
PB: predicated region body
PF: predicated region fallthrough
CT: control target
= control target key end

     0   :  { %14 = vsyncpa [#allocation3], 0  ;;  %s906_s0 = inlined_call_operand.hbm [shape: f32[8,16], index: 0, kind: input, shape index: {}]   ;;  %s907_s1 = inlined_call_operand.hbm [shape: f32[8,8], index: 1, kind: input, shape index: {}]   ;;  %s908_s2 = inlined_call_operand.hbm [shape: f32[24,128], index: 2, kind: input, shape index: {}]   ;;  %s909_s3 = inlined_call_operand.vmem [shape: f32[1,128], index: 3, kind: input, shape index: {}]   ;;  %s910_s4 = inlined_call_operand.hbm [shape: f32[128,128], index: 4, kind: input, shape index: {}]   ;;  %s911_s5 = inlined_call_operand.vmem [shape: f32[1,128], index: 5, kind: input, shape index: {}]   ;;  %s912_s6 = inlined_call_operand.hbm [shape: f32[128,128], index: 6, kind: input, shape index: {}]   ;;  %s913_s7 = inlined_call_operand.vmem [shape: f32[1,128], index: 7, kind: input, shape index: {}]   ;;  %s914_s8 = inlined_call_operand.vmem [shape: f32[1,128], index: 8, kind: input, shape index: {}]   ;;  %s915_s9 = inlined_call_operand.hbm [shape: f32[8,128], index: 9, kind: output, shape index: {}]  }
   0x1   :  { %15 = vsyncpa [#allocation6], 0 }
   0x2   :  { %16 = vsyncpa [#allocation9], 0 }
   0x3   :  { %17 = vsyncpa [#allocation4], 0  ;;  %s731_s30 = smov [#allocation5]   ;;  %s591_s13 = scalar_lea.hbm %s907_s1, 128 }
   0x4   :  { %s34_s10 = sshll.u32 %s731_s30, 4  ;;  %p592_p0 = scmp.ne.s32.totalorder %s907_s1, %s591_s13  ;;  %s35_s10 = int_to_ptr.vmem [resolvable:$true] %s34_s10 }
   0x5   :  { %p595_p1 = scmp.lt.u32.totalorder %s591_s13, %s907_s1 }
   0x7   :  { %p597_p2 = pnand %p595_p1, %p592_p0 }
   0x9   :  { %600 = shalt.err (!%p597_p2)
}
   0xa   :  { %s601_s18 = scalar_lea.vmem %s35_s10, 128  ;;  %p606_p4 = scmp.lt.s32.totalorder %s35_s10, %s35_s10 }
   0xb   :  { %p602_p3 = scmp.ne.s32.totalorder %s35_s10, %s601_s18  ;;  %p607_p5 = scmp.lt.s32.totalorder %s601_s18, %s601_s18 }
   0xd   :  { %p608_p6 = por %p607_p5, %p606_p4 }
   0xf   :  { %p609_p7 = pnand %p608_p6, %p602_p3 }
  0x11   :  { %612 = shalt.err (!%p609_p7)
}
  0x12   :  { %37 = dma.hbm_to_vmem [thread:$0]  %s907_s1, 128, %s35_s10, [#allocation6]  }
  0x13   :  { %s732_s21 = smov [#allocation8]   ;;  %s733_s23 = smov [#allocation2]  }
  0x14   :  { %s57_s22 = sshll.u32 %s732_s21, 4  ;;  %s24_s24 = sshll.u32 %s733_s23, 4  ;;  %s58_s22 = int_to_ptr.vmem [resolvable:$true] %s57_s22  ;;  %s25_s24 = int_to_ptr.vmem [resolvable:$true] %s24_s24 }
  0x15   :  { %s613_s27 = scalar_lea.hbm %s910_s4, 2048 }
  0x16   :  { %p614_p8 = scmp.ne.s32.totalorder %s910_s4, %s613_s27  ;;  %p617_p9 = scmp.lt.u32.totalorder %s613_s27, %s910_s4 }
  0x18   :  { %p619_p10 = pnand %p617_p9, %p614_p8 }
  0x1a   :  { %622 = shalt.err (!%p619_p10)
}
  0x1b   :  { %s623_s1 = scalar_lea.vmem %s58_s22, 2048  ;;  %p628_p12 = scmp.lt.s32.totalorder %s58_s22, %s58_s22 }
  0x1c   :  { %p624_p11 = scmp.ne.s32.totalorder %s58_s22, %s623_s1  ;;  %p629_p13 = scmp.lt.s32.totalorder %s623_s1, %s623_s1 }
  0x1e   :  { %p630_p0 = por %p629_p13, %p628_p12 }
  0x20   :  { %p631_p1 = pnand %p630_p0, %p624_p11 }
  0x22   :  { %634 = shalt.err (!%p631_p1)
}
  0x23   :  { %s734_s10 = smov 128   ;;  %s735_s12 = smov 8  }
  0x24   :  { %63 = dma.hbm_to_vmem [thread:$0]  %s910_s4, 2048, %s58_s22, [#allocation9], %s734_s10, %s734_s10, %s735_s12  }
  0x25   :  { %s635_s17 = scalar_lea.hbm %s906_s0, 128 }
  0x26   :  { %p636_p2 = scmp.ne.s32.totalorder %s906_s0, %s635_s17  ;;  %p639_p3 = scmp.lt.u32.totalorder %s635_s17, %s906_s0 }
  0x28   :  { %p641_p4 = pnand %p639_p3, %p636_p2 }
  0x2a   :  { %644 = shalt.err (!%p641_p4)
}
  0x2b   :  { %s645_s23 = scalar_lea.vmem %s25_s24, 128  ;;  %p650_p6 = scmp.lt.s32.totalorder %s25_s24, %s25_s24 }
  0x2c   :  { %p646_p5 = scmp.ne.s32.totalorder %s25_s24, %s645_s23  ;;  %p651_p7 = scmp.lt.s32.totalorder %s645_s23, %s645_s23 }
  0x2e   :  { %p652_p8 = por %p651_p7, %p650_p6 }
  0x30   :  { %p653_p9 = pnand %p652_p8, %p646_p5 }
  0x32   :  { %656 = shalt.err (!%p653_p9)
}
  0x33   :  { %27 = dma.hbm_to_vmem [thread:$0]  %s906_s0, 128, %s25_s24, [#allocation3]  }
  0x34   :  { %s736_s25 = smov [#allocation7]   ;;  %s737_s27 = smov [#allocation10]  }
  0x35   :  { %s43_s26 = sshll.u32 %s736_s25, 4  ;;  %s71_s28 = sshll.u32 %s737_s27, 4  ;;  %s44_s26 = int_to_ptr.vmem [resolvable:$true] %s43_s26  ;;  %s72_s28 = int_to_ptr.vmem [resolvable:$true] %s71_s28 }
  0x36   :  { %s657_s11 = scalar_lea.hbm %s908_s2, 384 }
  0x37   :  { %p658_p10 = scmp.ne.s32.totalorder %s908_s2, %s657_s11  ;;  %p661_p11 = scmp.lt.u32.totalorder %s657_s11, %s908_s2 }
  0x39   :  { %p663_p12 = pnand %p661_p11, %p658_p10 }
  0x3b   :  { %666 = shalt.err (!%p663_p12)
}
  0x3c   :  { %s667_s0 = scalar_lea.vmem %s44_s26, 384  ;;  %p672_p0 = scmp.lt.s32.totalorder %s44_s26, %s44_s26 }
  0x3d   :  { %p668_p13 = scmp.ne.s32.totalorder %s44_s26, %s667_s0  ;;  %p673_p1 = scmp.lt.s32.totalorder %s667_s0, %s667_s0 }
  0x3f   :  { %p674_p2 = por %p673_p1, %p672_p0 }
  0x41   :  { %p675_p3 = pnand %p674_p2, %p668_p13 }
  0x43   :  { %678 = shalt.err (!%p675_p3)
}
  0x44   :  { %49 = dma.hbm_to_vmem [thread:$0]  %s908_s2, 384, %s44_s26, [#allocation6], %s734_s10, %s734_s10, %s735_s12  }
  0x45   :  { %s679_s19 = scalar_lea.hbm %s912_s6, 2048 }
  0x46   :  { %p680_p4 = scmp.ne.s32.totalorder %s912_s6, %s679_s19  ;;  %p683_p5 = scmp.lt.u32.totalorder %s679_s19, %s912_s6 }
  0x48   :  { %p685_p6 = pnand %p683_p5, %p680_p4 }
  0x4a   :  { %688 = shalt.err (!%p685_p6)
}
  0x4b   :  { %s689_s22 = scalar_lea.vmem %s72_s28, 2048  ;;  %p694_p8 = scmp.lt.s32.totalorder %s72_s28, %s72_s28 }
  0x4c   :  { %p690_p7 = scmp.ne.s32.totalorder %s72_s28, %s689_s22  ;;  %p695_p9 = scmp.lt.s32.totalorder %s689_s22, %s689_s22 }
  0x4e   :  { %p696_p10 = por %p695_p9, %p694_p8 }
  0x50   :  { %p697_p11 = pnand %p696_p10, %p690_p7 }
  0x52   :  { %700 = shalt.err (!%p697_p11)
}
  0x53   :  { %77 = dma.hbm_to_vmem [thread:$0]  %s912_s6, 2048, %s72_s28, [#allocation9], %s734_s10, %s734_s10, %s735_s12  }
  0x54   :  { %723 = dma.done.wait [#allocation3], 128  }
  0x55   :  { %724 = vsyncadd [#allocation3], 4294967168 }
  0x56   :  { %725 = dma.done.wait [#allocation6], 512  }
  0x57   :  { %726 = vsyncadd [#allocation6], 4294966784 }
  0x58   :  { %727 = dma.done.wait [#allocation9], 4096  }
  0x59   :  { %728 = vsyncadd [#allocation9], 4294963200  ;;  %v738_v0 = vmov 0.0|0.0   ;;  %vm739_vm0 = vmmov 0   ;;  %v740_v1 = vmov 0.0   ;;  %v98_v2 = vld [vmem:[#allocation5] sm:$0xff] }
  0x5a   :  { %528 = vmatprep.subr.bf16.mxu0 %v738_v0  ;;  %531 = vmatprep.subr.bf16.mxu1 %v738_v0  ;;  %v105_v3 = vld [vmem:[#allocation7] sm:$0xff]  ;;  %v106_v4 = vld [vmem:[#allocation7 + $0x8] sm:$0xff]  ;;  %s741_s6 = smov 16   ;;  %v190_v6 = vld [vmem:[#allocation8] sm:$0xff]  ;;  %vm103_vm1 = vcmask 130048   ;;  %vm115_vm2 = vcmask 195584  }
  0x5b   :  { %455 = vmatprep.mubr.msk.f32.mxu0 %vm739_vm0, %v740_v1  ;;  %490 = vmatprep.mubr.msk.f32.mxu1 %vm739_vm0, %v740_v1  ;;  %v529_v5 = vpack.c.bf16 %v106_v4, %v105_v3  ;;  %v191_v7 = vld [vmem:[#allocation8 + $0x8] sm:$0xff]  ;;  %v192_v8 = vld [vmem:[#allocation8 + $0x10] sm:$0xff]  ;;  %v193_v9 = vld [vmem:[#allocation8 + $0x18] sm:$0xff]  ;;  %s742_s11 = smov [#allocation11]  }
  0x5c   :  { %100 = vrot.lane.b32.xlu0 %v98_v2, %s741_s6  ;;  %v532_v10 = vpack.c.bf16 %v191_v7, %v190_v6  ;;  %v107_v11 = vld [vmem:[#allocation7 + $0x10] sm:$0xff]  ;;  %v535_v12 = vpack.c.bf16 %v193_v9, %v192_v8  ;;  %v194_v13 = vld [vmem:[#allocation8 + $0x20] sm:$0xff]  ;;  %v195_v14 = vld [vmem:[#allocation8 + $0x28] sm:$0xff] }
  0x5d   :  { %530 = vmatpush3.bf16.msra.mxu0 %v529_v5  ;;  %v538_v15 = vpack.c.bf16 %v195_v14, %v194_v13  ;;  %v196_v16 = vld [vmem:[#allocation8 + $0x30] sm:$0xff]  ;;  %v197_v17 = vld [vmem:[#allocation8 + $0x38] sm:$0xff]  ;;  %v198_v19 = vld [vmem:[#allocation8 + $0x40] sm:$0xff] }
  0x5e   :  { %453 = vmatprep.subr.mxu0 %v740_v1  ;;  %533 = vmatpush3.bf16.msra.mxu1 %v532_v10  ;;  %v541_v18 = vpack.c.bf16 %v197_v17, %v196_v16  ;;  %v199_v20 = vld [vmem:[#allocation8 + $0x48] sm:$0xff]  ;;  %v200_v22 = vld [vmem:[#allocation8 + $0x50] sm:$0xff]  ;;  %v201_v23 = vld [vmem:[#allocation8 + $0x58] sm:$0xff] }
  0x5f   :  { %534 = vmatprep.subr.bf16.mxu1 %v738_v0  ;;  %v544_v21 = vpack.c.bf16 %v199_v20, %v198_v19  ;;  %v547_v24 = vpack.c.bf16 %v201_v23, %v200_v22  ;;  %v202_v25 = vld [vmem:[#allocation8 + $0x60] sm:$0xff]  ;;  %v203_v26 = vld [vmem:[#allocation8 + $0x68] sm:$0xff]  ;;  %v97_v28 = vld [vmem:[#allocation2] sm:$0xff] }
  0x60   :  { %v550_v27 = vpack.c.bf16 %v203_v26, %v202_v25  ;;  %v204_v31 = vld [vmem:[#allocation8 + $0x70] sm:$0xff]  ;;  %v205_v32 = vld [vmem:[#allocation8 + $0x78] sm:$0xff]  ;;  %v284_v34 = vld [vmem:[#allocation10] sm:$0xff] }
  0x61   :  { %454 = vmatpush3.msra.mxu0 %v107_v11  ;;  %v553_v33 = vpack.c.bf16 %v205_v32, %v204_v31  ;;  %v285_v35 = vld [vmem:[#allocation10 + $0x8] sm:$0xff]  ;;  %v286_v36 = vld [vmem:[#allocation10 + $0x10] sm:$0xff]  ;;  %v287_v38 = vld [vmem:[#allocation10 + $0x18] sm:$0xff] }
  0x62   :  { %555 = vmatprep.subr.bf16.mxu0 %v738_v0  ;;  %536 = vmatpush3.bf16.msra.mxu1 %v535_v12  ;;  %v556_v37 = vpack.c.bf16 %v285_v35, %v284_v34  ;;  %v559_v39 = vpack.c.bf16 %v287_v38, %v286_v36  ;;  %v288_v40 = vld [vmem:[#allocation10 + $0x20] sm:$0xff]  ;;  %v289_v41 = vld [vmem:[#allocation10 + $0x28] sm:$0xff]  ;;  %v290_v43 = vld [vmem:[#allocation10 + $0x30] sm:$0xff] }
  0x63   :  { %537 = vmatprep.subr.bf16.mxu1 %v738_v0  ;;  %v562_v42 = vpack.c.bf16 %v289_v41, %v288_v40  ;;  %v291_v44 = vld [vmem:[#allocation10 + $0x38] sm:$0xff]  ;;  %v292_v46 = vld [vmem:[#allocation10 + $0x40] sm:$0xff]  ;;  %v293_v47 = vld [vmem:[#allocation10 + $0x48] sm:$0xff] }
  0x64   :  { %v565_v45 = vpack.c.bf16 %v291_v44, %v290_v43  ;;  %v568_v48 = vpack.c.bf16 %v293_v47, %v292_v46  ;;  %v294_v49 = vld [vmem:[#allocation10 + $0x50] sm:$0xff]  ;;  %v295_v50 = vld [vmem:[#allocation10 + $0x58] sm:$0xff]  ;;  %v296_v52 = vld [vmem:[#allocation10 + $0x60] sm:$0xff] }
  0x65   :  { %v571_v51 = vpack.c.bf16 %v295_v50, %v294_v49  ;;  %v297_v53 = vld [vmem:[#allocation10 + $0x68] sm:$0xff]  ;;  %v406_v55 = vld [vmem:[%s909_s3] ss:$0 sm:$0xff]  ;;  %v298_v60 = vld [vmem:[#allocation10 + $0x70] sm:$0xff] }
  0x66   :  { %539 = vmatpush3.bf16.msra.mxu1 %v538_v15  ;;  %v574_v54 = vpack.c.bf16 %v297_v53, %v296_v52  ;;  %v299_v61 = vld [vmem:[#allocation10 + $0x78] sm:$0xff] }
  0x67   :  { %540 = vmatprep.subr.bf16.mxu1 %v738_v0  ;;  %v577_v62 = vpack.c.bf16 %v299_v61, %v298_v60  ;;  %v408_v63 = vld [vmem:[%s911_s5] ss:$0 sm:$0xff]  ;;  %s395_s5 = sshll.u32 %s742_s11, 4  ;;  %s396_s5 = int_to_ptr.vmem [resolvable:$true] %s395_s5 }
  0x68   :  { %v409_v4 = vld [vmem:[%s913_s7] ss:$0 sm:$0xff]  ;;  %s701_s1 = scalar_lea.vmem %s396_s5, 128  ;;  %p706_p13 = scmp.lt.s32.totalorder %s396_s5, %s396_s5 }
  0x69   :  { %v410_v9 = vld [vmem:[%s914_s8] ss:$0 sm:$0xff]  ;;  %p702_p12 = scmp.ne.s32.totalorder %s396_s5, %s701_s1  ;;  %p707_p0 = scmp.lt.s32.totalorder %s701_s1, %s701_s1 }
  0x6a   :  { %542 = vmatpush3.bf16.msra.mxu1 %v541_v18 }
  0x6b   :  { %543 = vmatprep.subr.bf16.mxu1 %v738_v0  ;;  %p708_p1 = por %p707_p0, %p706_p13 }
  0x6d   :  { %p709_p2 = pnand %p708_p1, %p702_p12 }
  0x6e   :  { %545 = vmatpush3.bf16.msra.mxu1 %v544_v21 }
  0x6f   :  { %546 = vmatprep.subr.bf16.mxu1 %v738_v0 }
  0x72   :  { %548 = vmatpush3.bf16.msra.mxu1 %v547_v24 }
  0x73   :  { %549 = vmatprep.subr.bf16.mxu1 %v738_v0 }
  0x76   :  { %551 = vmatpush3.bf16.msra.mxu1 %v550_v27 }
  0x77   :  { %552 = vmatprep.subr.bf16.mxu1 %v738_v0 }
  0x7a   :  { %554 = vmatpush3.bf16.msra.mxu1 %v553_v33 }
  0xce   :  { %v101_v29 = vpop.permute.xlu0 %100 }
  0xcf   :  { %v104_v30 = vsel %vm103_vm1, %v97_v28, %v101_v29 }
  0xd0   :  { %456 = vmatmul.mubr.msk.f32.vlgmr.msra.gmra.mrb[0].mxu0 %vm115_vm2, %v104_v30 }
  0xd1   :  { %525 = vmatprep.mubr.msk.f32.mxu0 %vm739_vm0, %v740_v1  ;;  %557 = vmatpush3.bf16.msra.mxu0 %v556_v37 }
  0xd2   :  { %558 = vmatprep.subr.bf16.mxu0 %v738_v0 }
  0xd5   :  { %560 = vmatpush3.bf16.msra.mxu0 %v559_v39 }
  0xd6   :  { %561 = vmatprep.subr.bf16.mxu0 %v738_v0 }
  0xd9   :  { %563 = vmatpush3.bf16.msra.mxu0 %v562_v42 }
  0xda   :  { %564 = vmatprep.subr.bf16.mxu0 %v738_v0 }
  0xdd   :  { %566 = vmatpush3.bf16.msra.mxu0 %v565_v45 }
  0xde   :  { %567 = vmatprep.subr.bf16.mxu0 %v738_v0 }
  0xe1   :  { %569 = vmatpush3.bf16.msra.mxu0 %v568_v48 }
  0xe2   :  { %570 = vmatprep.subr.bf16.mxu0 %v738_v0 }
  0xe5   :  { %572 = vmatpush3.bf16.msra.mxu0 %v571_v51 }
  0xe6   :  { %573 = vmatprep.subr.bf16.mxu0 %v738_v0 }
  0xe9   :  { %575 = vmatpush3.bf16.msra.mxu0 %v574_v54 }
  0xea   :  { %576 = vmatprep.subr.bf16.mxu0 %v738_v0 }
  0xed   :  { %578 = vmatpush3.bf16.msra.mxu0 %v577_v62 }
 0x1a3   :  { %v185_v56 = vpop.f32.mrb[0].mxu0 }
 0x1a4   :  { %v186_v57 = vadd.f32 %v406_v55, %v185_v56  ;;  %v457_v58 = vpop.f32.mrb[1].mxu0 }
 0x1a6   :  { %v189_v59 = vmax.f32 %v186_v57, 0.0 }
 0x1a8   :  { %491 = vmatmul.mubr.f32.vlgmr.msra.gmra.mrb[0].mxu1 %v189_v59 }
 0x27b   :  { %v279_v1 = vpop.f32.mrb[0].mxu1 }
 0x27c   :  { %v280_v2 = vadd.f32 %v408_v63, %v279_v1  ;;  %v492_v0 = vpop.f32.mrb[1].mxu1 }
 0x27e   :  { %v283_v3 = vmax.f32 %v280_v2, 0.0 }
 0x280   :  { %526 = vmatmul.mubr.f32.vlgmr.msra.gmra.mrb[2].mxu0 %v283_v3 }
 0x353   :  { %v373_v5 = vpop.f32.mrb[2].mxu0 }
 0x354   :  { %v374_v6 = vadd.f32 %v409_v4, %v373_v5  ;;  %v527_v7 = vpop.f32.mrb[3].mxu0 }
 0x356   :  { %v378_v8 = vmul.f32 %v374_v6, %v374_v6 }
 0x358   :  { %v379_v10 = vsub.f32 %v378_v8, %v374_v6 }
 0x35a   :  { %v386_v11 = vmul.f32 %v410_v9, %v379_v10 }
 0x35c   :  { %v387_v12 = vadd.f32 %v386_v11, %v374_v6 }
 0x35e   :  { %388 = vst [vmem:[#allocation11] sm:$0xff] %v387_v12 }
 0x35f   :  { %712 = shalt.err (!%p709_p2)
}
 0x360   :  { %s713_s14 = scalar_lea.hbm %s915_s9, 128 }
 0x361   :  { %p714_p3 = scmp.ne.s32.totalorder %s915_s9, %s713_s14  ;;  %p717_p4 = scmp.lt.u32.totalorder %s713_s14, %s915_s9 }
 0x363   :  { %p719_p5 = pnand %p717_p4, %p714_p3 }
 0x365   :  { %722 = shalt.err (!%p719_p5)
}
 0x366   :  { %398 = dma.vmem_to_hbm [thread:$0]  %s396_s5, 128, %s915_s9, [#allocation4]  }
 0x367   :  { %729 = dma.done.wait [#allocation4], 128  }
 0x368   :  { %730 = vsyncadd [#allocation4], 4294967168 }
 0x369   :  { %402 = vsyncpa [#allocation3], 1 }
 0x36a   :  { %403 = vsyncpa [#allocation6], 1 }
 0x36b   :  { %404 = vsyncpa [#allocation9], 1 }
 0x36c   :  { %405 = vsyncpa [#allocation4], 1 }

</bundles_post_ra>
